<compile_context>
chip_gen: v6e
topology: v6e:2x2x1
jax: 0.10.0
libtpu: 0.0.40
codegen_flags: <defaults>
</compile_context>

<pallas_src>
import functools

import jax
import jax.numpy as jnp
import numpy as np
from jax.experimental import pallas as pl
from jax.experimental.pallas import tpu as pltpu

_SQRT_HALF = 0.7071067811865476
_SUB, _LANE = 8, 128


# --------------------------- fused Convcap kernel ---------------------------
def convcap_kernel(x_ref, wih_ref, whh_ref, bh_ref,
                   emb_ref, wemb_ref, wimg_ref, wc_ref, bc_ref,
                   wout_ref, bout_ref,
                   out_ref, xw_scr, xbuf, *, S, B, Bp, Tp):
    H = whh_ref.shape[0]
    D = wemb_ref.shape[1]

    # ---------------- encoder RNN (f32) ----------------
    # Input projection + bias hoisted out of the recurrence: one big matmul +
    # one VPU pass off the serial critical path. The scratch is (S, Bp, H) with
    # Bp a sublane multiple, so xw_scr[t] is a full aligned 8-row slab.
    xw = jnp.dot(x_ref[...], wih_ref[...], preferred_element_type=jnp.float32)
    xw_scr[...] = (xw + bh_ref[...]).reshape(S, Bp, H)
    w_hh = whh_ref[...]

    def rnn_step(t, h):
        return jnp.tanh(xw_scr[t] +
                        jnp.dot(h, w_hh, preferred_element_type=jnp.float32))

    h_fin = jax.lax.fori_loop(0, S, rnn_step,
                              jnp.zeros((Bp, H), jnp.float32), unroll=True)

    # ---------------- conv caption decoder ----------------
    # MXU operands bf16 (f32 accumulate); biases / GLU / residual stay f32.
    img = jnp.dot(h_fin.astype(jnp.bfloat16), wimg_ref[...],
                  preferred_element_type=jnp.float32)[:B]             # [B, D]
    x = jnp.dot(emb_ref[...], wemb_ref[...],
                preferred_element_type=jnp.float32)                   # [B*Tp, D]
    x3 = x.reshape(B, Tp, D) + img[:, None, :]   # per-batch conditioning (no mixing)

    # Causal conv1d (k=3, left zero-pad 2) with NO concatenates: write x3 once
    # into a zero-left-padded (B, Tp+8, D) VMEM scratch (all writes tile
    # aligned) and issue THREE accumulating K=D matmuls against w_conv[0..2]
    # using static sublane-shifted views. The two shifted reads are one-off XLU
    # sublane rotations, off any serial path; batches never mix.
    xbuf[:, 0:_SUB, :] = jnp.zeros((B, _SUB, D), jnp.float32)
    xbuf[:, _SUB:, :] = x3
    v0 = xbuf[:, _SUB - 2:_SUB - 2 + Tp, :].reshape(B * Tp, D)        # shift 2
    v1 = xbuf[:, _SUB - 1:_SUB - 1 + Tp, :].reshape(B * Tp, D)        # shift 1
    conv = (jnp.dot(v0.astype(jnp.bfloat16), wc_ref[0],
                    preferred_element_type=jnp.float32)
            + jnp.dot(v1.astype(jnp.bfloat16), wc_ref[1],
                      preferred_element_type=jnp.float32)
            + jnp.dot(x3.reshape(B * Tp, D).astype(jnp.bfloat16), wc_ref[2],
                      preferred_element_type=jnp.float32)
            + bc_ref[...])                                            # [B*Tp, 2D]

    # GLU + residual (* sqrt(0.5)), then classifier over this grid point's
    # lane-dense vocab tile (output store is a full-width unmasked vst).
    a = conv[:, :D]
    g = conv[:, D:]
    xr = (x3.reshape(B * Tp, D) + a * jax.nn.sigmoid(g)) * jnp.float32(_SQRT_HALF)
    out_ref[...] = (jnp.dot(xr.astype(jnp.bfloat16), wout_ref[...],
                            preferred_element_type=jnp.float32)
                    + bout_ref[...])                                  # [B*Tp, TV]


# --------------------------- Convcap forward ---------------------------
def _vocab_tile(vp):
    # Largest lane-multiple tile dividing the padded vocab (>=128).
    for cand in (512, 256, 128):
        if vp % cand == 0:
            return cand
    return vp


def convcap_forward(vid_feats, labels, word_embedd, params, mode="train"):
    B, S, Dv = vid_feats.shape
    H = params["w_hh"].shape[0]
    E = word_embedd.shape[1]
    D = params["w_emb2d"].shape[1]
    V = params["w_out"].shape[1]
    T = labels.shape[1] - 1

    Bp = pl.cdiv(B, _SUB) * _SUB      # sublane-pad the RNN batch
    Tp = pl.cdiv(T, _SUB) * _SUB      # sublane-pad the caption length
    Vp = pl.cdiv(V, _LANE) * _LANE    # lane-pad the vocab for dense stores
    TV = _vocab_tile(Vp)              # classifier tile -> "parallel" grid axis

    # Wrapper-side layout plumbing (tiny, once per call):
    #  * time-major, batch-padded, flattened video feats for the hoisted
    #    input projection,
    #  * label-embedding gather (glue) + T padding, rows flattened to B*Tp,
    #  * decoder MXU operands cast to bf16 (biases stay f32),
    #  * vocab padded to a 128-lane multiple and tiled along the grid.
    xt = jnp.transpose(vid_feats, (1, 0, 2))                           # [S, B, Dv]
    x2d = jnp.pad(xt, ((0, 0), (0, Bp - B), (0, 0))).reshape(S * Bp, Dv)
    emb = word_embedd[labels[:, :-1]]                                  # [B, T, E]
    emb_p = jnp.pad(emb, ((0, 0), (0, Tp - T), (0, 0))).reshape(B * Tp, E)
    emb_p = emb_p.astype(jnp.bfloat16)
    w_emb = params["w_emb2d"].astype(jnp.bfloat16)
    w_img = params["w_img"].astype(jnp.bfloat16)
    w_conv = params["w_conv"].astype(jnp.bfloat16)                     # [3, D, 2D]
    w_out_p = jnp.pad(params["w_out"], ((0, 0), (0, Vp - V))).astype(jnp.bfloat16)
    b_out_p = jnp.pad(params["b_out"], ((0, 0), (0, Vp - V)))

    rep2 = lambda shape: pl.BlockSpec(shape, lambda j: (0, 0))

    # NOTE: the pre-classifier work is recomputed per vocab tile; with a single
    # tile (toy sizes) this is free, and at real vocab sizes the classifier
    # matmul dominates, so the recompute buys v7x's second TensorCore cheaply.
    out = pl.pallas_call(
        functools.partial(convcap_kernel, S=S, B=B, Bp=Bp, Tp=Tp),
        out_shape=jax.ShapeDtypeStruct((B * Tp, Vp), jnp.float32),
        grid=(Vp // TV,),
        in_specs=[
            rep2((S * Bp, Dv)),                                  # video feats
            rep2((Dv, H)),                                       # w_ih
            rep2((H, H)),                                        # w_hh
            rep2((1, H)),                                        # b_h
            rep2((B * Tp, E)),                                   # label embeddings
            rep2((E, D)),                                        # w_emb2d
            rep2((H, D)),                                        # w_img
            pl.BlockSpec((3, D, 2 * D), lambda j: (0, 0, 0)),    # w_conv taps
            rep2((1, 2 * D)),                                    # b_conv
            pl.BlockSpec((D, TV), lambda j: (0, j)),             # w_out vocab tile
            pl.BlockSpec((1, TV), lambda j: (0, j)),             # b_out vocab tile
        ],
        out_specs=pl.BlockSpec((B * Tp, TV), lambda j: (0, j)),
        scratch_shapes=[pltpu.VMEM((S, Bp, H), jnp.float32),     # hoisted x@W_ih+b
                        pltpu.VMEM((B, Tp + _SUB, D), jnp.float32)],  # causal pad buf
        compiler_params=pltpu.CompilerParams(
            dimension_semantics=("parallel",)),
    )(x2d, params["w_ih"], params["w_hh"], params["b_h"],
      emb_p, w_emb, w_img, w_conv, params["b_conv"],
      w_out_p, b_out_p)

    return out.reshape(B, Tp, Vp)[:, :T, :V]


# --------------------------- pure-JAX reference ---------------------------
def convcap_ref(vid_feats, labels, word_embedd, p):
    B, S, Dv = vid_feats.shape
    H = p["w_hh"].shape[0]
    h = jnp.zeros((B, H), jnp.float32)
    for t in range(S):
        h = jnp.tanh(vid_feats[:, t] @ p["w_ih"] + h @ p["w_hh"] + p["b_h"])
    emb = word_embedd[labels[:, :-1]]
    D = p["w_emb2d"].shape[1]
    x = emb @ p["w_emb2d"] + (h @ p["w_img"])[:, None, :]
    T = emb.shape[1]
    xp = jnp.pad(x, ((0, 0), (2, 0), (0, 0)))
    conv = sum(jnp.einsum("btd,dk->btk", xp[:, j:j + T], p["w_conv"][j])
               for j in range(3)) + p["b_conv"]
    a, g = conv[..., :D], conv[..., D:]
    xr = (x + a * jax.nn.sigmoid(g)) * np.float32(np.sqrt(0.5))
    return jnp.einsum("btd,dv->btv", xr, p["w_out"]) + p["b_out"]


# --------------------------- main ---------------------------
if __name__ == "__main__":
    B, S, Dv = 2, 8, 32       # batch, video seq len, video feat dim
    H, E, D = 32, 32, 32      # rnn hidden, word embed dim, decoder dim
    V, MAX_LEN = 64, 8        # vocab, caption max length (T = MAX_LEN - 1)

    key = jax.random.PRNGKey(0)
    ks = jax.random.split(key, 12)
    scale = jnp.float32(0.1)
    params = {
        "w_ih":    scale * jax.random.normal(ks[0], (Dv, H), jnp.float32),
        "w_hh":    scale * jax.random.normal(ks[1], (H, H), jnp.float32),
        "b_h":     scale * jax.random.normal(ks[2], (1, H), jnp.float32),
        "w_emb2d": scale * jax.random.normal(ks[3], (E, D), jnp.float32),
        "w_img":   scale * jax.random.normal(ks[4], (H, D), jnp.float32),
        "w_conv":  scale * jax.random.normal(ks[5], (3, D, 2 * D), jnp.float32),
        "b_conv":  scale * jax.random.normal(ks[6], (1, 2 * D), jnp.float32),
        "w_out":   scale * jax.random.normal(ks[7], (D, V), jnp.float32),
        "b_out":   scale * jax.random.normal(ks[8], (1, V), jnp.float32),
    }

    vid_feats = jax.random.normal(ks[9], (B, S, Dv), jnp.float32)
    labels = jax.random.randint(ks[10], (B, MAX_LEN), 0, V, jnp.int32)
    word_embedd = scale * jax.random.normal(ks[11], (V, E), jnp.float32)

    seq_prob = convcap_forward(vid_feats, labels, word_embedd, params)
    seq_prob = jax.block_until_ready(seq_prob)

    ref = jax.block_until_ready(convcap_ref(vid_feats, labels, word_embedd, params))
    assert seq_prob.shape == (B, MAX_LEN - 1, V), seq_prob.shape
    np.testing.assert_allclose(np.asarray(seq_prob), np.asarray(ref),
                               rtol=2e-2, atol=2e-2)

    # TODO(synk): the original encoder/decoder nn.Modules are external to this
    # file; a representative tanh-RNN encoder + conv/GLU caption decoder is used.
    print("KERNEL_OK")
</pallas_src>

<mosaic_0001>
module attributes {stable_mosaic.version = 11 : i64} {
  func.func @convcap_kernel(%arg0: i32, %arg1: memref<64x32xf32, #tpu.memory_space<vmem>>, %arg2: memref<32x32xf32, #tpu.memory_space<vmem>>, %arg3: memref<32x32xf32, #tpu.memory_space<vmem>>, %arg4: memref<1x32xf32, #tpu.memory_space<vmem>>, %arg5: memref<16x32xbf16, #tpu.memory_space<vmem>>, %arg6: memref<32x32xbf16, #tpu.memory_space<vmem>>, %arg7: memref<32x32xbf16, #tpu.memory_space<vmem>>, %arg8: memref<3x32x64xbf16, #tpu.memory_space<vmem>>, %arg9: memref<1x64xf32, #tpu.memory_space<vmem>>, %arg10: memref<32x128xbf16, #tpu.memory_space<vmem>>, %arg11: memref<1x128xf32, #tpu.memory_space<vmem>>, %arg12: memref<16x128xf32, #tpu.memory_space<vmem>>, %arg13: memref<8x8x32xf32, #tpu.memory_space<vmem>>, %arg14: memref<2x16x32xf32, #tpu.memory_space<vmem>>) attributes {dimension_semantics = [#tpu.dimension_semantics<parallel>], iteration_bounds = array<i64: 1>, scalar_prefetch = 0 : i64, scratch_operands = 2 : i64, tpu.core_type = #tpu.core_type<tc>, window_params = [{pipeline_mode = #tpu.pipeline_mode<synchronous>, transform_indices = @transform_0, window_bounds = array<i64: 64, 32>}, {pipeline_mode = #tpu.pipeline_mode<synchronous>, transform_indices = @transform_1, window_bounds = array<i64: 32, 32>}, {pipeline_mode = #tpu.pipeline_mode<synchronous>, transform_indices = @transform_2, window_bounds = array<i64: 32, 32>}, {pipeline_mode = #tpu.pipeline_mode<synchronous>, transform_indices = @transform_3, window_bounds = array<i64: 1, 32>}, {pipeline_mode = #tpu.pipeline_mode<synchronous>, transform_indices = @transform_4, window_bounds = array<i64: 16, 32>}, {pipeline_mode = #tpu.pipeline_mode<synchronous>, transform_indices = @transform_5, window_bounds = array<i64: 32, 32>}, {pipeline_mode = #tpu.pipeline_mode<synchronous>, transform_indices = @transform_6, window_bounds = array<i64: 32, 32>}, {pipeline_mode = #tpu.pipeline_mode<synchronous>, transform_indices = @transform_7, window_bounds = array<i64: 3, 32, 64>}, {pipeline_mode = #tpu.pipeline_mode<synchronous>, transform_indices = @transform_8, window_bounds = array<i64: 1, 64>}, {transform_indices = @transform_9, window_bounds = array<i64: 32, 128>}, {transform_indices = @transform_10, window_bounds = array<i64: 1, 128>}, {transform_indices = @transform_11, window_bounds = array<i64: 16, 128>}]} {
    %c0 = arith.constant 0 : index
    %c0_0 = arith.constant 0 : index
    %0 = vector.load %arg1[%c0, %c0_0] : memref<64x32xf32, #tpu.memory_space<vmem>>, vector<64x32xf32>
    %c0_1 = arith.constant 0 : index
    %c0_2 = arith.constant 0 : index
    %1 = vector.load %arg2[%c0_1, %c0_2] : memref<32x32xf32, #tpu.memory_space<vmem>>, vector<32x32xf32>
    %cst = arith.constant dense<0.000000e+00> : vector<64x32xf32>
    %2 = tpu.matmul %0, %1, %cst {dimension_numbers = #tpu.dot_dimension_numbers<[1], [0], [0], [1], [0, 0, 1, 1], [], []>} : vector<64x32xf32>, vector<32x32xf32>, vector<64x32xf32> -> vector<64x32xf32>
    %c0_3 = arith.constant 0 : index
    %c0_4 = arith.constant 0 : index
    %3 = vector.load %arg4[%c0_3, %c0_4] : memref<1x32xf32, #tpu.memory_space<vmem>>, vector<1x32xf32>
    %4 = vector.broadcast %3 : vector<1x32xf32> to vector<64x32xf32>
    %5 = arith.addf %2, %4 : vector<64x32xf32>
    %6 = vector.shape_cast %5 : vector<64x32xf32> to vector<8x8x32xf32>
    %c0_5 = arith.constant 0 : index
    %c0_6 = arith.constant 0 : index
    %c0_7 = arith.constant 0 : index
    %7 = vector.load %arg13[%c0_5, %c0_6, %c0_7] : memref<8x8x32xf32, #tpu.memory_space<vmem>>, vector<8x8x32xf32>
    tpu.vector_store %arg13[%c0_5, %c0_6, %c0_7], %6 {strides = array<i32>} : memref<8x8x32xf32, #tpu.memory_space<vmem>>, vector<8x8x32xf32>,
    %c0_8 = arith.constant 0 : index
    %c0_9 = arith.constant 0 : index
    %8 = vector.load %arg3[%c0_8, %c0_9] : memref<32x32xf32, #tpu.memory_space<vmem>>, vector<32x32xf32>
    %cst_10 = arith.constant 0.000000e+00 : f32
    %9 = vector.broadcast %cst_10 : f32 to vector<8x32xf32>
    %c0_i32 = arith.constant 0 : i32
    %10 = arith.index_cast %c0_i32 : i32 to index
    %c0_11 = arith.constant 0 : index
    %c0_12 = arith.constant 0 : index
    %11 = vector.load %arg13[%10, %c0_11, %c0_12] : memref<8x8x32xf32, #tpu.memory_space<vmem>>, vector<1x8x32xf32>
    %12 = vector.shape_cast %11 : vector<1x8x32xf32> to vector<8x32xf32>
    %cst_13 = arith.constant dense<0.000000e+00> : vector<8x32xf32>
    %13 = tpu.matmul %9, %8, %cst_13 {dimension_numbers = #tpu.dot_dimension_numbers<[1], [0], [0], [1], [0, 0, 1, 1], [], []>} : vector<8x32xf32>, vector<32x32xf32>, vector<8x32xf32> -> vector<8x32xf32>
    %14 = arith.addf %12, %13 : vector<8x32xf32>
    %15 = math.tanh %14 : vector<8x32xf32>
    %c1_i32 = arith.constant 1 : i32
    %16 = arith.index_cast %c1_i32 : i32 to index
    %c0_14 = arith.constant 0 : index
    %c0_15 = arith.constant 0 : index
    %17 = vector.load %arg13[%16, %c0_14, %c0_15] : memref<8x8x32xf32, #tpu.memory_space<vmem>>, vector<1x8x32xf32>
    %18 = vector.shape_cast %17 : vector<1x8x32xf32> to vector<8x32xf32>
    %cst_16 = arith.constant dense<0.000000e+00> : vector<8x32xf32>
    %19 = tpu.matmul %15, %8, %cst_16 {dimension_numbers = #tpu.dot_dimension_numbers<[1], [0], [0], [1], [0, 0, 1, 1], [], []>} : vector<8x32xf32>, vector<32x32xf32>, vector<8x32xf32> -> vector<8x32xf32>
    %20 = arith.addf %18, %19 : vector<8x32xf32>
    %21 = math.tanh %20 : vector<8x32xf32>
    %c2_i32 = arith.constant 2 : i32
    %22 = arith.index_cast %c2_i32 : i32 to index
    %c0_17 = arith.constant 0 : index
    %c0_18 = arith.constant 0 : index
    %23 = vector.load %arg13[%22, %c0_17, %c0_18] : memref<8x8x32xf32, #tpu.memory_space<vmem>>, vector<1x8x32xf32>
    %24 = vector.shape_cast %23 : vector<1x8x32xf32> to vector<8x32xf32>
    %cst_19 = arith.constant dense<0.000000e+00> : vector<8x32xf32>
    %25 = tpu.matmul %21, %8, %cst_19 {dimension_numbers = #tpu.dot_dimension_numbers<[1], [0], [0], [1], [0, 0, 1, 1], [], []>} : vector<8x32xf32>, vector<32x32xf32>, vector<8x32xf32> -> vector<8x32xf32>
    %26 = arith.addf %24, %25 : vector<8x32xf32>
    %27 = math.tanh %26 : vector<8x32xf32>
    %c3_i32 = arith.constant 3 : i32
    %28 = arith.index_cast %c3_i32 : i32 to index
    %c0_20 = arith.constant 0 : index
    %c0_21 = arith.constant 0 : index
    %29 = vector.load %arg13[%28, %c0_20, %c0_21] : memref<8x8x32xf32, #tpu.memory_space<vmem>>, vector<1x8x32xf32>
    %30 = vector.shape_cast %29 : vector<1x8x32xf32> to vector<8x32xf32>
    %cst_22 = arith.constant dense<0.000000e+00> : vector<8x32xf32>
    %31 = tpu.matmul %27, %8, %cst_22 {dimension_numbers = #tpu.dot_dimension_numbers<[1], [0], [0], [1], [0, 0, 1, 1], [], []>} : vector<8x32xf32>, vector<32x32xf32>, vector<8x32xf32> -> vector<8x32xf32>
    %32 = arith.addf %30, %31 : vector<8x32xf32>
    %33 = math.tanh %32 : vector<8x32xf32>
    %c4_i32 = arith.constant 4 : i32
    %34 = arith.index_cast %c4_i32 : i32 to index
    %c0_23 = arith.constant 0 : index
    %c0_24 = arith.constant 0 : index
    %35 = vector.load %arg13[%34, %c0_23, %c0_24] : memref<8x8x32xf32, #tpu.memory_space<vmem>>, vector<1x8x32xf32>
    %36 = vector.shape_cast %35 : vector<1x8x32xf32> to vector<8x32xf32>
    %cst_25 = arith.constant dense<0.000000e+00> : vector<8x32xf32>
    %37 = tpu.matmul %33, %8, %cst_25 {dimension_numbers = #tpu.dot_dimension_numbers<[1], [0], [0], [1], [0, 0, 1, 1], [], []>} : vector<8x32xf32>, vector<32x32xf32>, vector<8x32xf32> -> vector<8x32xf32>
    %38 = arith.addf %36, %37 : vector<8x32xf32>
    %39 = math.tanh %38 : vector<8x32xf32>
    %c5_i32 = arith.constant 5 : i32
    %40 = arith.index_cast %c5_i32 : i32 to index
    %c0_26 = arith.constant 0 : index
    %c0_27 = arith.constant 0 : index
    %41 = vector.load %arg13[%40, %c0_26, %c0_27] : memref<8x8x32xf32, #tpu.memory_space<vmem>>, vector<1x8x32xf32>
    %42 = vector.shape_cast %41 : vector<1x8x32xf32> to vector<8x32xf32>
    %cst_28 = arith.constant dense<0.000000e+00> : vector<8x32xf32>
    %43 = tpu.matmul %39, %8, %cst_28 {dimension_numbers = #tpu.dot_dimension_numbers<[1], [0], [0], [1], [0, 0, 1, 1], [], []>} : vector<8x32xf32>, vector<32x32xf32>, vector<8x32xf32> -> vector<8x32xf32>
    %44 = arith.addf %42, %43 : vector<8x32xf32>
    %45 = math.tanh %44 : vector<8x32xf32>
    %c6_i32 = arith.constant 6 : i32
    %46 = arith.index_cast %c6_i32 : i32 to index
    %c0_29 = arith.constant 0 : index
    %c0_30 = arith.constant 0 : index
    %47 = vector.load %arg13[%46, %c0_29, %c0_30] : memref<8x8x32xf32, #tpu.memory_space<vmem>>, vector<1x8x32xf32>
    %48 = vector.shape_cast %47 : vector<1x8x32xf32> to vector<8x32xf32>
    %cst_31 = arith.constant dense<0.000000e+00> : vector<8x32xf32>
    %49 = tpu.matmul %45, %8, %cst_31 {dimension_numbers = #tpu.dot_dimension_numbers<[1], [0], [0], [1], [0, 0, 1, 1], [], []>} : vector<8x32xf32>, vector<32x32xf32>, vector<8x32xf32> -> vector<8x32xf32>
    %50 = arith.addf %48, %49 : vector<8x32xf32>
    %51 = math.tanh %50 : vector<8x32xf32>
    %c7_i32 = arith.constant 7 : i32
    %52 = arith.index_cast %c7_i32 : i32 to index
    %c0_32 = arith.constant 0 : index
    %c0_33 = arith.constant 0 : index
    %53 = vector.load %arg13[%52, %c0_32, %c0_33] : memref<8x8x32xf32, #tpu.memory_space<vmem>>, vector<1x8x32xf32>
    %54 = vector.shape_cast %53 : vector<1x8x32xf32> to vector<8x32xf32>
    %cst_34 = arith.constant dense<0.000000e+00> : vector<8x32xf32>
    %55 = tpu.matmul %51, %8, %cst_34 {dimension_numbers = #tpu.dot_dimension_numbers<[1], [0], [0], [1], [0, 0, 1, 1], [], []>} : vector<8x32xf32>, vector<32x32xf32>, vector<8x32xf32> -> vector<8x32xf32>
    %56 = arith.addf %54, %55 : vector<8x32xf32>
    %57 = math.tanh %56 : vector<8x32xf32>
    %c8_i32 = arith.constant 8 : i32
    %58 = arith.truncf %57 : vector<8x32xf32> to vector<8x32xbf16>
    %c0_35 = arith.constant 0 : index
    %c0_36 = arith.constant 0 : index
    %59 = vector.load %arg7[%c0_35, %c0_36] : memref<32x32xbf16, #tpu.memory_space<vmem>>, vector<32x32xbf16>
    %cst_37 = arith.constant dense<0.000000e+00> : vector<8x32xf32>
    %60 = tpu.matmul %58, %59, %cst_37 {dimension_numbers = #tpu.dot_dimension_numbers<[1], [0], [0], [1], [0, 0, 1, 1], [], []>} : vector<8x32xbf16>, vector<32x32xbf16>, vector<8x32xf32> -> vector<8x32xf32>
    %61 = vector.extract_strided_slice %60 {offsets = [0, 0], sizes = [2, 32], strides = [1, 1]} : vector<8x32xf32> to vector<2x32xf32>
    %c0_38 = arith.constant 0 : index
    %c0_39 = arith.constant 0 : index
    %62 = vector.load %arg5[%c0_38, %c0_39] : memref<16x32xbf16, #tpu.memory_space<vmem>>, vector<16x32xbf16>
    %c0_40 = arith.constant 0 : index
    %c0_41 = arith.constant 0 : index
    %63 = vector.load %arg6[%c0_40, %c0_41] : memref<32x32xbf16, #tpu.memory_space<vmem>>, vector<32x32xbf16>
    %cst_42 = arith.constant dense<0.000000e+00> : vector<16x32xf32>
    %64 = tpu.matmul %62, %63, %cst_42 {dimension_numbers = #tpu.dot_dimension_numbers<[1], [0], [0], [1], [0, 0, 1, 1], [], []>} : vector<16x32xbf16>, vector<32x32xbf16>, vector<16x32xf32> -> vector<16x32xf32>
    %65 = vector.shape_cast %64 : vector<16x32xf32> to vector<2x8x32xf32>
    %66 = vector.shape_cast %61 : vector<2x32xf32> to vector<2x1x32xf32>
    %67 = vector.broadcast %66 : vector<2x1x32xf32> to vector<2x8x32xf32>
    %68 = arith.addf %65, %67 : vector<2x8x32xf32>
    %cst_43 = arith.constant 0.000000e+00 : f32
    %69 = vector.broadcast %cst_43 : f32 to vector<2x8x32xf32>
    %c0_44 = arith.constant 0 : index
    %c0_45 = arith.constant 0 : index
    %c0_46 = arith.constant 0 : index
    %70 = vector.load %arg14[%c0_44, %c0_45, %c0_46] : memref<2x16x32xf32, #tpu.memory_space<vmem>>, vector<2x8x32xf32>
    tpu.vector_store %arg14[%c0_44, %c0_45, %c0_46], %69 {strides = array<i32>} : memref<2x16x32xf32, #tpu.memory_space<vmem>>, vector<2x8x32xf32>,
    %c0_47 = arith.constant 0 : index
    %c8 = arith.constant 8 : index
    %c0_48 = arith.constant 0 : index
    %71 = vector.load %arg14[%c0_47, %c8, %c0_48] : memref<2x16x32xf32, #tpu.memory_space<vmem>>, vector<2x8x32xf32>
    tpu.vector_store %arg14[%c0_47, %c8, %c0_48], %68 {strides = array<i32>} : memref<2x16x32xf32, #tpu.memory_space<vmem>>, vector<2x8x32xf32>,
    %c0_49 = arith.constant 0 : index
    %c6 = arith.constant 6 : index
    %c0_50 = arith.constant 0 : index
    %72 = vector.load %arg14[%c0_49, %c6, %c0_50] : memref<2x16x32xf32, #tpu.memory_space<vmem>>, vector<2x8x32xf32>
    %73 = vector.shape_cast %72 : vector<2x8x32xf32> to vector<16x32xf32>
    %c0_51 = arith.constant 0 : index
    %c7 = arith.constant 7 : index
    %c0_52 = arith.constant 0 : index
    %74 = vector.load %arg14[%c0_51, %c7, %c0_52] : memref<2x16x32xf32, #tpu.memory_space<vmem>>, vector<2x8x32xf32>
    %75 = vector.shape_cast %74 : vector<2x8x32xf32> to vector<16x32xf32>
    %76 = arith.truncf %73 : vector<16x32xf32> to vector<16x32xbf16>
    %c0_53 = arith.constant 0 : index
    %c0_54 = arith.constant 0 : index
    %c0_55 = arith.constant 0 : index
    %77 = vector.load %arg8[%c0_53, %c0_54, %c0_55] : memref<3x32x64xbf16, #tpu.memory_space<vmem>>, vector<1x32x64xbf16>
    %78 = vector.shape_cast %77 : vector<1x32x64xbf16> to vector<32x64xbf16>
    %cst_56 = arith.constant dense<0.000000e+00> : vector<16x64xf32>
    %79 = tpu.matmul %76, %78, %cst_56 {dimension_numbers = #tpu.dot_dimension_numbers<[1], [0], [0], [1], [0, 0, 1, 1], [], []>} : vector<16x32xbf16>, vector<32x64xbf16>, vector<16x64xf32> -> vector<16x64xf32>
    %80 = arith.truncf %75 : vector<16x32xf32> to vector<16x32xbf16>
    %c1 = arith.constant 1 : index
    %c0_57 = arith.constant 0 : index
    %c0_58 = arith.constant 0 : index
    %81 = vector.load %arg8[%c1, %c0_57, %c0_58] : memref<3x32x64xbf16, #tpu.memory_space<vmem>>, vector<1x32x64xbf16>
    %82 = vector.shape_cast %81 : vector<1x32x64xbf16> to vector<32x64xbf16>
    %cst_59 = arith.constant dense<0.000000e+00> : vector<16x64xf32>
    %83 = tpu.matmul %80, %82, %cst_59 {dimension_numbers = #tpu.dot_dimension_numbers<[1], [0], [0], [1], [0, 0, 1, 1], [], []>} : vector<16x32xbf16>, vector<32x64xbf16>, vector<16x64xf32> -> vector<16x64xf32>
    %84 = arith.addf %79, %83 : vector<16x64xf32>
    %85 = vector.shape_cast %68 : vector<2x8x32xf32> to vector<16x32xf32>
    %86 = arith.truncf %85 : vector<16x32xf32> to vector<16x32xbf16>
    %c2 = arith.constant 2 : index
    %c0_60 = arith.constant 0 : index
    %c0_61 = arith.constant 0 : index
    %87 = vector.load %arg8[%c2, %c0_60, %c0_61] : memref<3x32x64xbf16, #tpu.memory_space<vmem>>, vector<1x32x64xbf16>
    %88 = vector.shape_cast %87 : vector<1x32x64xbf16> to vector<32x64xbf16>
    %cst_62 = arith.constant dense<0.000000e+00> : vector<16x64xf32>
    %89 = tpu.matmul %86, %88, %cst_62 {dimension_numbers = #tpu.dot_dimension_numbers<[1], [0], [0], [1], [0, 0, 1, 1], [], []>} : vector<16x32xbf16>, vector<32x64xbf16>, vector<16x64xf32> -> vector<16x64xf32>
    %90 = arith.addf %84, %89 : vector<16x64xf32>
    %c0_63 = arith.constant 0 : index
    %c0_64 = arith.constant 0 : index
    %91 = vector.load %arg9[%c0_63, %c0_64] : memref<1x64xf32, #tpu.memory_space<vmem>>, vector<1x64xf32>
    %92 = vector.broadcast %91 : vector<1x64xf32> to vector<16x64xf32>
    %93 = arith.addf %90, %92 : vector<16x64xf32>
    %94 = vector.extract_strided_slice %93 {offsets = [0, 0], sizes = [16, 32], strides = [1, 1]} : vector<16x64xf32> to vector<16x32xf32>
    %95 = vector.extract_strided_slice %93 {offsets = [0, 32], sizes = [16, 32], strides = [1, 1]} : vector<16x64xf32> to vector<16x32xf32>
    %96 = vector.shape_cast %68 : vector<2x8x32xf32> to vector<16x32xf32>
    %97 = arith.negf %95 : vector<16x32xf32>
    %98 = math.exp %97 : vector<16x32xf32>
    %cst_65 = arith.constant 1.000000e+00 : f32
    %99 = vector.broadcast %cst_65 : f32 to vector<16x32xf32>
    %100 = arith.addf %99, %98 : vector<16x32xf32>
    %101 = arith.divf %99, %100 : vector<16x32xf32>
    %102 = arith.mulf %94, %101 : vector<16x32xf32>
    %103 = arith.addf %96, %102 : vector<16x32xf32>
    %cst_66 = arith.constant 0.707106769 : f32
    %104 = vector.broadcast %cst_66 : f32 to vector<16x32xf32>
    %105 = arith.mulf %103, %104 : vector<16x32xf32>
    %106 = arith.truncf %105 : vector<16x32xf32> to vector<16x32xbf16>
    %c0_67 = arith.constant 0 : index
    %c0_68 = arith.constant 0 : index
    %107 = vector.load %arg10[%c0_67, %c0_68] : memref<32x128xbf16, #tpu.memory_space<vmem>>, vector<32x128xbf16>
    %cst_69 = arith.constant dense<0.000000e+00> : vector<16x128xf32>
    %108 = tpu.matmul %106, %107, %cst_69 {dimension_numbers = #tpu.dot_dimension_numbers<[1], [0], [0], [1], [0, 0, 1, 1], [], []>} : vector<16x32xbf16>, vector<32x128xbf16>, vector<16x128xf32> -> vector<16x128xf32>
    %c0_70 = arith.constant 0 : index
    %c0_71 = arith.constant 0 : index
    %109 = vector.load %arg11[%c0_70, %c0_71] : memref<1x128xf32, #tpu.memory_space<vmem>>, vector<1x128xf32>
    %110 = vector.broadcast %109 : vector<1x128xf32> to vector<16x128xf32>
    %111 = arith.addf %108, %110 : vector<16x128xf32>
    %c0_72 = arith.constant 0 : index
    %c0_73 = arith.constant 0 : index
    %112 = vector.load %arg12[%c0_72, %c0_73] : memref<16x128xf32, #tpu.memory_space<vmem>>, vector<16x128xf32>
    tpu.vector_store %arg12[%c0_72, %c0_73], %111 {strides = array<i32>} : memref<16x128xf32, #tpu.memory_space<vmem>>, vector<16x128xf32>,
    return
  }
  func.func @transform_0(%arg0: i32) -> (i32, i32) {
    %c0_i32 = arith.constant 0 : i32
    %c0_i32_0 = arith.constant 0 : i32
    %c0_i32_1 = arith.constant 0 : i32
    return %c0_i32, %c0_i32_0 : i32, i32
  }
  func.func @transform_1(%arg0: i32) -> (i32, i32) {
    %c0_i32 = arith.constant 0 : i32
    %c0_i32_0 = arith.constant 0 : i32
    %c0_i32_1 = arith.constant 0 : i32
    return %c0_i32, %c0_i32_0 : i32, i32
  }
  func.func @transform_2(%arg0: i32) -> (i32, i32) {
    %c0_i32 = arith.constant 0 : i32
    %c0_i32_0 = arith.constant 0 : i32
    %c0_i32_1 = arith.constant 0 : i32
    return %c0_i32, %c0_i32_0 : i32, i32
  }
  func.func @transform_3(%arg0: i32) -> (i32, i32) {
    %c0_i32 = arith.constant 0 : i32
    %c0_i32_0 = arith.constant 0 : i32
    %c0_i32_1 = arith.constant 0 : i32
    return %c0_i32, %c0_i32_0 : i32, i32
  }
  func.func @transform_4(%arg0: i32) -> (i32, i32) {
    %c0_i32 = arith.constant 0 : i32
    %c0_i32_0 = arith.constant 0 : i32
    %c0_i32_1 = arith.constant 0 : i32
    return %c0_i32, %c0_i32_0 : i32, i32
  }
  func.func @transform_5(%arg0: i32) -> (i32, i32) {
    %c0_i32 = arith.constant 0 : i32
    %c0_i32_0 = arith.constant 0 : i32
    %c0_i32_1 = arith.constant 0 : i32
    return %c0_i32, %c0_i32_0 : i32, i32
  }
  func.func @transform_6(%arg0: i32) -> (i32, i32) {
    %c0_i32 = arith.constant 0 : i32
    %c0_i32_0 = arith.constant 0 : i32
    %c0_i32_1 = arith.constant 0 : i32
    return %c0_i32, %c0_i32_0 : i32, i32
  }
  func.func @transform_7(%arg0: i32) -> (i32, i32, i32) {
    %c0_i32 = arith.constant 0 : i32
    %c0_i32_0 = arith.constant 0 : i32
    %c0_i32_1 = arith.constant 0 : i32
    %c0_i32_2 = arith.constant 0 : i32
    return %c0_i32, %c0_i32_0, %c0_i32_1 : i32, i32, i32
  }
  func.func @transform_8(%arg0: i32) -> (i32, i32) {
    %c0_i32 = arith.constant 0 : i32
    %c0_i32_0 = arith.constant 0 : i32
    %c0_i32_1 = arith.constant 0 : i32
    return %c0_i32, %c0_i32_0 : i32, i32
  }
  func.func @transform_9(%arg0: i32) -> (i32, i32) {
    %c0_i32 = arith.constant 0 : i32
    %c0_i32_0 = arith.constant 0 : i32
    return %c0_i32, %arg0 : i32, i32
  }
  func.func @transform_10(%arg0: i32) -> (i32, i32) {
    %c0_i32 = arith.constant 0 : i32
    %c0_i32_0 = arith.constant 0 : i32
    return %c0_i32, %arg0 : i32, i32
  }
  func.func @transform_11(%arg0: i32) -> (i32, i32) {
    %c0_i32 = arith.constant 0 : i32
    %c0_i32_0 = arith.constant 0 : i32
    return %c0_i32, %arg0 : i32, i32
  }
}

</mosaic_0001>

<bundles_post_ra>
// kernel: tpu_custom_call.1
= control target key start
LH: loop header
LB: loop body
LE: loop exit
PB: predicated region body
PF: predicated region fallthrough
CT: control target
= control target key end

     0   :  { %16 = vsyncpa [#allocation5], 0  ;;  %s2148_s0 = inlined_call_operand.vmem [shape: f32[64,32], index: 0, kind: input, shape index: {}]   ;;  %s2149_s1 = inlined_call_operand.vmem [shape: f32[32,32], index: 1, kind: input, shape index: {}]   ;;  %s2150_s2 = inlined_call_operand.hbm [shape: f32[32,32], index: 2, kind: input, shape index: {}]   ;;  %s2151_s3 = inlined_call_operand.hbm [shape: f32[1,32], index: 3, kind: input, shape index: {}]   ;;  %s2152_s4 = inlined_call_operand.hbm [shape: bf16[16,32], index: 4, kind: input, shape index: {}]   ;;  %s2153_s5 = inlined_call_operand.vmem [shape: bf16[32,32], index: 5, kind: input, shape index: {}]   ;;  %s2154_s6 = inlined_call_operand.hbm [shape: bf16[32,32], index: 6, kind: input, shape index: {}]   ;;  %s2155_s7 = inlined_call_operand.vmem [shape: bf16[3,32,64], index: 7, kind: input, shape index: {}]   ;;  %s2156_s8 = inlined_call_operand.hbm [shape: f32[1,64], index: 8, kind: input, shape index: {}]   ;;  %s2157_s9 = inlined_call_operand.vmem [shape: bf16[32,128], index: 9, kind: input, shape index: {}]   ;;  %s2158_s10 = inlined_call_operand.vmem [shape: f32[1,128], index: 10, kind: input, shape index: {}]   ;;  %s2159_s11 = inlined_call_operand.hbm [shape: f32[16,128], index: 11, kind: output, shape index: {}]  }
   0x1   :  { %17 = vsyncpa [#allocation8], 0 }
   0x2   :  { %18 = vsyncpa [#allocation11], 0 }
   0x3   :  { %19 = vsyncpa [#allocation6], 0  ;;  %s1813_s17 = smov [#allocation7]  }
   0x4   :  { %s42_s18 = sshll.u32 %s1813_s17, 4  ;;  %s43_s18 = int_to_ptr.vmem [resolvable:$true] %s42_s18 }
   0x5   :  { %s1693_s19 = scalar_lea.vmem %s43_s18, 16  ;;  %s1697_s20 = scalar_lea.vmem %s43_s18, 32 }
   0x6   :  { %p1694_p0 = scmp.ne.s32.totalorder %s43_s18, %s1693_s19  ;;  %p1698_p1 = scmp.lt.s32.totalorder %s43_s18, %s43_s18 }
   0x7   :  { %p1699_p2 = scmp.lt.s32.totalorder %s1697_s20, %s1693_s19 }
   0x9   :  { %p1700_p3 = por %p1699_p2, %p1698_p1 }
   0xb   :  { %p1701_p4 = pnand %p1700_p3, %p1694_p0 }
   0xd   :  { %1704 = shalt.err (!%p1701_p4)
}
   0xe   :  { %45 = dma.hbm_to_vmem [thread:$0]  %s2151_s3, 16, %s43_s18, [#allocation8]  }
   0xf   :  { %s1814_s23 = smov [#allocation10]   ;;  %s1815_s25 = smov [#allocation4]  }
  0x10   :  { %s65_s24 = sshll.u32 %s1814_s23, 4  ;;  %s29_s26 = sshll.u32 %s1815_s25, 4  ;;  %s66_s24 = int_to_ptr.vmem [resolvable:$true] %s65_s24  ;;  %s30_s26 = int_to_ptr.vmem [resolvable:$true] %s29_s26 }
  0x11   :  { %s1713_s27 = scalar_lea.vmem %s66_s24, 256  ;;  %p1718_p6 = scmp.lt.s32.totalorder %s66_s24, %s66_s24 }
  0x12   :  { %p1714_p5 = scmp.ne.s32.totalorder %s66_s24, %s1713_s27  ;;  %p1719_p7 = scmp.lt.s32.totalorder %s1713_s27, %s1713_s27 }
  0x14   :  { %p1720_p8 = por %p1719_p7, %p1718_p6 }
  0x16   :  { %p1721_p9 = pnand %p1720_p8, %p1714_p5 }
  0x18   :  { %1724 = shalt.err (!%p1721_p9)
}
  0x19   :  { %s1816_s28 = smov 64   ;;  %s1817_s29 = smov 4  }
  0x1a   :  { %71 = dma.hbm_to_vmem [thread:$0]  %s2154_s6, 256, %s66_s24, [#allocation11], %s1816_s28, %s1816_s28, %s1817_s29  }
  0x1b   :  { %s1733_s3 = scalar_lea.vmem %s30_s26, 512  ;;  %p1738_p11 = scmp.lt.s32.totalorder %s30_s26, %s30_s26 }
  0x1c   :  { %p1734_p10 = scmp.ne.s32.totalorder %s30_s26, %s1733_s3  ;;  %p1739_p12 = scmp.lt.s32.totalorder %s1733_s3, %s1733_s3 }
  0x1e   :  { %p1740_p13 = por %p1739_p12, %p1738_p11 }
  0x20   :  { %p1741_p0 = pnand %p1740_p13, %p1734_p10 }
  0x22   :  { %1744 = shalt.err (!%p1741_p0)
}
  0x23   :  { %s1818_s13 = smov 128   ;;  %s1819_s14 = smov 8  }
  0x24   :  { %35 = dma.hbm_to_vmem [thread:$0]  %s2150_s2, 512, %s30_s26, [#allocation5], %s1818_s13, %s1818_s13, %s1819_s14  }
  0x25   :  { %s1820_s17 = smov [#allocation9]   ;;  %s1821_s6 = smov [#allocation12]  }
  0x26   :  { %s51_s18 = sshll.u32 %s1820_s17, 4  ;;  %s80_s19 = sshll.u32 %s1821_s6, 4  ;;  %s52_s18 = int_to_ptr.vmem [resolvable:$true] %s51_s18  ;;  %s81_s19 = int_to_ptr.vmem [resolvable:$true] %s80_s19 }
  0x27   :  { %s1753_s20 = scalar_lea.vmem %s52_s18, 128  ;;  %p1758_p2 = scmp.lt.s32.totalorder %s52_s18, %s52_s18 }
  0x28   :  { %p1754_p1 = scmp.ne.s32.totalorder %s52_s18, %s1753_s20  ;;  %p1759_p3 = scmp.lt.s32.totalorder %s1753_s20, %s1753_s20 }
  0x2a   :  { %p1760_p4 = por %p1759_p3, %p1758_p2 }
  0x2c   :  { %p1761_p5 = pnand %p1760_p4, %p1754_p1 }
  0x2e   :  { %1764 = shalt.err (!%p1761_p5)
}
  0x2f   :  { %57 = dma.hbm_to_vmem [thread:$0]  %s2152_s4, 128, %s52_s18, [#allocation8], %s1816_s28, %s1816_s28, %s1817_s29  }
  0x30   :  { %s1773_s23 = scalar_lea.vmem %s81_s19, 16  ;;  %s1777_s2 = scalar_lea.vmem %s81_s19, 32 }
  0x31   :  { %p1774_p6 = scmp.ne.s32.totalorder %s81_s19, %s1773_s23  ;;  %p1778_p7 = scmp.lt.s32.totalorder %s81_s19, %s81_s19 }
  0x32   :  { %p1779_p8 = scmp.lt.s32.totalorder %s1777_s2, %s1773_s23 }
  0x34   :  { %p1780_p9 = por %p1779_p8, %p1778_p7 }
  0x36   :  { %p1781_p10 = pnand %p1780_p9, %p1774_p6 }
  0x38   :  { %1784 = shalt.err (!%p1781_p10)
}
  0x39   :  { %83 = dma.hbm_to_vmem [thread:$0]  %s2156_s8, 16, %s81_s19, [#allocation11]  }
  0x3a   :  { %1805 = dma.done.wait [#allocation5], 512  }
  0x3b   :  { %1806 = vsyncadd [#allocation5], 4294966784 }
  0x3c   :  { %1807 = dma.done.wait [#allocation8], 144  }
  0x3d   :  { %1808 = vsyncadd [#allocation8], 4294967152 }
  0x3e   :  { %1809 = dma.done.wait [#allocation11], 272  }
  0x3f   :  { %1810 = vsyncadd [#allocation11], 4294967024  ;;  %vm123_vm0 = vcmask 261120   ;;  %v1822_v0 = vmov 0.0   ;;  %vm1823_vm1 = vmmov 0   ;;  %v115_v1 = vld [vmem:[%s2149_s1 + $0x18] sm:$0xff] }
  0x40   :  { %1498 = vmatprep.subr.mxu1 %v1822_v0  ;;  %1042 = vst.msk [vmem:[#allocation3] sm:$0xff] %vm123_vm0, %v1822_v0  ;;  %1043 = vst.msk [vmem:[#allocation3 + $0x10] sm:$0xff] %vm123_vm0, %v1822_v0  ;;  %1506 = vmatprep.mubr.msk.f32.mxu1 %vm1823_vm1, %v1822_v0  ;;  %v114_v2 = vld [vmem:[%s2149_s1 + $0x10] sm:$0xff]  ;;  %v113_v3 = vld [vmem:[%s2149_s1 + $0x8] sm:$0xff]  ;;  %s1825_s22 = smov 96   ;;  %s1826_s2 = smov [#allocation13]  }
  0x41   :  { %1478 = vmatprep.subr.mxu0 %v115_v1  ;;  %v104_v4 = vld [vmem:[%s2148_s0] sm:$0xff]  ;;  %v1928_v6 = vld [vmem:[#allocation4 + $0x18] sm:$0xff]  ;;  %v1930_v7 = vld [vmem:[#allocation4 + $0x10] sm:$0xff]  ;;  %s1347_s24 = sshll.u32 %s1826_s2, 4  ;;  %s1348_s24 = int_to_ptr.vmem [resolvable:$true] %s1347_s24 }
  0x42   :  { %1479 = vmatpush3.msra.mxu0 %v115_v1  ;;  %v112_v5 = vld [vmem:[%s2149_s1] sm:$0xff]  ;;  %1486 = vmatprep.mubr.msk.f32.mxu0 %vm123_vm0, %v104_v4  ;;  %v1933_v8 = vld [vmem:[#allocation4 + $0x8] sm:$0xff]  ;;  %v106_v21 = vld [vmem:[%s2148_s0 + $0x10] sm:$0xff]  ;;  %s1785_s25 = scalar_lea.vmem %s1348_s24, 256  ;;  %p1790_p12 = scmp.lt.s32.totalorder %s1348_s24, %s1348_s24 }
  0x43   :  { %1480 = vmatprep.subr.mxu0 %v114_v2  ;;  %1499 = vmatpush3.msra.mxu1 %v1928_v6  ;;  %v105_v9 = vld [vmem:[%s2148_s0 + $0x8] sm:$0xff]  ;;  %v1939_v10 = vld [vmem:[#allocation4] sm:$0xff]  ;;  %v107_v22 = vld [vmem:[%s2148_s0 + $0x18] sm:$0xff]  ;;  %p1786_p11 = scmp.ne.s32.totalorder %s1348_s24, %s1785_s25  ;;  %p1791_p13 = scmp.lt.s32.totalorder %s1785_s25, %s1785_s25 }
  0x44   :  { %1481 = vmatpush3.msra.mxu0 %v114_v2  ;;  %1500 = vmatprep.subr.mxu1 %v1822_v0  ;;  %v1968_v11 = vld [vmem:[#allocation7] ss:$0 sm:$0xff]  ;;  %v109_v24 = vld [vmem:[%s2148_s0 + $0x28] sm:$0xff]  ;;  %v110_v25 = vld [vmem:[%s2148_s0 + $0x30] sm:$0xff] }
  0x45   :  { %1482 = vmatprep.subr.mxu0 %v113_v3  ;;  %1501 = vmatpush3.msra.mxu1 %v1930_v7  ;;  %v108_v23 = vld [vmem:[%s2148_s0 + $0x20] sm:$0xff]  ;;  %v111_v26 = vld [vmem:[%s2148_s0 + $0x38] sm:$0xff]  ;;  %p1792_p0 = por %p1791_p13, %p1790_p12 }
  0x46   :  { %1483 = vmatpush3.msra.mxu0 %v113_v3  ;;  %1502 = vmatprep.subr.mxu1 %v1822_v0 }
  0x47   :  { %1484 = vmatprep.subr.mxu0 %v112_v5  ;;  %1503 = vmatpush3.msra.mxu1 %v1933_v8  ;;  %p1793_p1 = pnand %p1792_p0, %p1786_p11 }
  0x48   :  { %1485 = vmatpush3.msra.mxu0 %v112_v5  ;;  %1504 = vmatprep.subr.mxu1 %v1822_v0 }
  0x49   :  { %1487 = vmatmul.mubr.msk.f32.vlgmr.msra.gmra.mxu0 %vm123_vm0, %v105_v9  ;;  %1505 = vmatpush3.msra.mxu1 %v1939_v10  ;;  %v1651_v9 = vld [vmem:[#allocation10] sm:$0xff]  }
  0x4a   :  { %1507 = vmatmul.mubr.f32.vlgmr.msra.gmra.mxu1 %v1822_v0  ;;  %1509 = vmatprep.subr.mxu1 %v1822_v0 }
  0x4b   :  { %1510 = vmatpush3.msra.mxu1 %v1928_v6  ;;  %1517 = vmatprep.mubr.msk.f32.mxu1 %vm1823_vm1, %v1822_v0 }
  0x4c   :  { %1511 = vmatprep.subr.mxu1 %v1822_v0  ;;  %1520 = vmatprep.subr.mxu0 %v1822_v0 }
  0x4d   :  { %1512 = vmatpush3.msra.mxu1 %v1930_v7  ;;  %1521 = vmatpush3.msra.mxu0 %v1928_v6 }
  0x4e   :  { %1513 = vmatprep.subr.mxu1 %v1822_v0  ;;  %1522 = vmatprep.subr.mxu0 %v1822_v0 }
  0x4f   :  { %1514 = vmatpush3.msra.mxu1 %v1933_v8  ;;  %1523 = vmatpush3.msra.mxu0 %v1930_v7 }
  0x50   :  { %1515 = vmatprep.subr.mxu1 %v1822_v0  ;;  %1524 = vmatprep.subr.mxu0 %v1822_v0 }
  0x51   :  { %1516 = vmatpush3.msra.mxu1 %v1939_v10  ;;  %1525 = vmatpush3.msra.mxu0 %v1933_v8 }
  0x52   :  { %1526 = vmatprep.subr.mxu0 %v1822_v0  ;;  %1531 = vmatprep.subr.mxu1 %v1822_v0 }
  0x53   :  { %1527 = vmatpush3.msra.mxu0 %v1939_v10  ;;  %1489 = vmatprep.mubr.msk.f32.mxu0 %vm123_vm0, %v106_v21  ;;  %v1653_v21 = vld [vmem:[%s2155_s7 + $0x18] sm:$0xff]  }
  0x54   :  { %1542 = vmatprep.subr.mxu0 %v1822_v0  ;;  %1490 = vmatmul.mubr.msk.f32.gmra.mxu0 %vm123_vm0, %v107_v22  ;;  %v1654_v22 = vld [vmem:[%s2155_s7 + $0x8] sm:$0xff]  }
  0x55   :  { %1492 = vmatprep.mubr.msk.f32.mxu0 %vm123_vm0, %v108_v23  ;;  %v1655_v23 = vld [vmem:[%s2155_s7 + $0x10] sm:$0xff]  }
  0x58   :  { %1493 = vmatmul.mubr.msk.f32.gmra.mxu0 %vm123_vm0, %v109_v24  ;;  %v1656_v24 = vld [vmem:[%s2155_s7] sm:$0xff]  }
  0x59   :  { %1495 = vmatprep.mubr.msk.f32.mxu0 %vm123_vm0, %v110_v25  ;;  %v1824_v25 = vmov 1966171168  }
  0x5c   :  { %1496 = vmatmul.mubr.msk.f32.gmra.mxu0 %vm123_vm0, %v111_v26  ;;  %v1009_v26 = vunpack.c.l.s4 %v1824_v25 }
  0x5d   :  { %1528 = vmatprep.mubr.msk.f32.mxu0 %vm1823_vm1, %v1822_v0 }
 0x109   :  { %v1488_v12 = vpop.f32.mrf.mxu0 }
 0x10a   :  { %v220_v13 = vadd.f32 %v1488_v12, %v1968_v11  ;;  %v335_v14 = vpop.f32.mrf.mxu1 }
 0x10b   :  { %v214_v15 = vpop.f32.mrf.mxu0 }
 0x10c   :  { %254 = vst.msk [vmem:[#allocation2 + $0x8] sm:$0xff] %vm123_vm0, %v220_v13  ;;  %v215_v16 = vadd.f32 %v1968_v11, %v214_v15  ;;  %v1508_v17 = vpop.f32.mrf.mxu1 }
 0x10e   :  { %253 = vst.msk [vmem:[#allocation2] sm:$0xff] %vm123_vm0, %v215_v16 }
 0x113   :  { %v342_v27 = vld [vmem:[#allocation2 + $0x8] sm:$0xff] }
 0x114   :  { %v1491_v32 = vpop.f32.mrf.mxu0 }
 0x115   :  { %v265_v18 = vld [vmem:[#allocation2] sm:$0xff]  ;;  %v230_v33 = vadd.f32 %v1491_v32, %v1968_v11 }
 0x116   :  { %v339_v19 = vadd.f32 %v335_v14, %v265_v18  ;;  %v224_v34 = vpop.f32.mrf.mxu0 }
 0x117   :  { %256 = vst.msk [vmem:[#allocation2 + $0x18] sm:$0xff] %vm123_vm0, %v230_v33  ;;  %v225_v35 = vadd.f32 %v1968_v11, %v224_v34 }
 0x118   :  { %1661 = vtanh.f32 %v339_v19  ;;  %v1494_v36 = vpop.f32.mrf.mxu0 }
 0x119   :  { %255 = vst.msk [vmem:[#allocation2 + $0x10] sm:$0xff] %vm123_vm0, %v225_v35  ;;  %v240_v37 = vadd.f32 %v1494_v36, %v1968_v11 }
 0x11a   :  { %v234_v38 = vpop.f32.mrf.mxu0 }
 0x11b   :  { %258 = vst.msk [vmem:[#allocation2 + $0x28] sm:$0xff] %vm123_vm0, %v240_v37  ;;  %v235_v39 = vadd.f32 %v1968_v11, %v234_v38 }
 0x11c   :  { %v1497_v40 = vpop.f32.mrf.mxu0 }
 0x11d   :  { %257 = vst.msk [vmem:[#allocation2 + $0x20] sm:$0xff] %vm123_vm0, %v235_v39  ;;  %v250_v41 = vadd.f32 %v1497_v40, %v1968_v11 }
 0x11e   :  { %v244_v42 = vpop.f32.mrf.mxu0  ;;  %v496_v49 = vld [vmem:[#allocation2 + $0x18] sm:$0xff] }
 0x11f   :  { %260 = vst.msk [vmem:[#allocation2 + $0x38] sm:$0xff] %vm123_vm0, %v250_v41  ;;  %v245_v43 = vadd.f32 %v1968_v11, %v244_v42 }
 0x120   :  { %v419_v44 = vld [vmem:[#allocation2 + $0x10] sm:$0xff] }
 0x121   :  { %259 = vst.msk [vmem:[#allocation2 + $0x30] sm:$0xff] %vm123_vm0, %v245_v43 }
 0x122   :  { %v650_v59 = vld [vmem:[#allocation2 + $0x28] sm:$0xff] }
 0x124   :  { %v573_v54 = vld [vmem:[#allocation2 + $0x20] sm:$0xff] }
 0x125   :  { %v1662_v20 = vpop.eup %1661 }
 0x126   :  { %1518 = vmatmul.mubr.msk.f32.vlgmr.msra.gmra.mxu1 %vm123_vm0, %v1662_v20  ;;  %v804_v11 = vld [vmem:[#allocation2 + $0x38] sm:$0xff] }
 0x127   :  { %1532 = vmatpush3.msra.mxu1 %v1928_v6  ;;  %1539 = vmatprep.mubr.msk.f32.mxu1 %vm1823_vm1, %v1822_v0 }
 0x128   :  { %1533 = vmatprep.subr.mxu1 %v1822_v0  ;;  %v727_v1 = vld [vmem:[#allocation2 + $0x30] sm:$0xff] }
 0x129   :  { %1534 = vmatpush3.msra.mxu1 %v1930_v7 }
 0x12a   :  { %1535 = vmatprep.subr.mxu1 %v1822_v0 }
 0x12b   :  { %1536 = vmatpush3.msra.mxu1 %v1933_v8 }
 0x12c   :  { %1537 = vmatprep.subr.mxu1 %v1822_v0 }
 0x12d   :  { %1538 = vmatpush3.msra.mxu1 %v1939_v10 }
 0x12e   :  { %1553 = vmatprep.subr.mxu1 %v1822_v0 }
 0x1e6   :  { %v412_v28 = vpop.f32.mrf.mxu1 }
 0x1e7   :  { %v416_v29 = vadd.f32 %v412_v28, %v342_v27  ;;  %v1011_v27 = vlaneseq  ;;  %v1010_v28 = vunpack.c.0.s8 %v1009_v26 }
 0x1e8   :  { %v1519_v30 = vpop.f32.mrf.mxu1 }
 0x1e9   :  { %1663 = vtanh.f32 %v416_v29  ;;  %v1012_v29 = vshrl.u32 %v1011_v27, 7  ;;  %v1404_v27 = vld [vmem:[%s2158_s10] ss:$0 sm:$0xff] }
 0x1eb   :  { %v1013_v30 = vsub.s32 %v1010_v28, %v1012_v29  ;;  %v1032_v33 = vsub.s32 0, %v1012_v29 }
 0x1f6   :  { %v1664_v31 = vpop.eup %1663 }
 0x1f7   :  { %1529 = vmatmul.mubr.msk.f32.vlgmr.msra.gmra.mxu0 %vm123_vm0, %v1664_v31 }
 0x1f8   :  { %1543 = vmatpush3.msra.mxu0 %v1928_v6  ;;  %1550 = vmatprep.mubr.msk.f32.mxu0 %vm1823_vm1, %v1822_v0 }
 0x1f9   :  { %1544 = vmatprep.subr.mxu0 %v1822_v0 }
 0x1fa   :  { %1545 = vmatpush3.msra.mxu0 %v1930_v7 }
 0x1fb   :  { %1546 = vmatprep.subr.mxu0 %v1822_v0 }
 0x1fc   :  { %1547 = vmatpush3.msra.mxu0 %v1933_v8 }
 0x1fd   :  { %1548 = vmatprep.subr.mxu0 %v1822_v0 }
 0x1fe   :  { %1549 = vmatpush3.msra.mxu0 %v1939_v10 }
 0x1ff   :  { %1564 = vmatprep.subr.mxu0 %v1822_v0 }
 0x2b7   :  { %v489_v45 = vpop.f32.mrf.mxu0 }
 0x2b8   :  { %v493_v46 = vadd.f32 %v489_v45, %v419_v44  ;;  %v1657_v45 = vld [vmem:[%s2155_s7 + $0x28] sm:$0xff]  }
 0x2b9   :  { %v1530_v47 = vpop.f32.mrf.mxu0 }
 0x2ba   :  { %1665 = vtanh.f32 %v493_v46 }
 0x2c7   :  { %v1666_v48 = vpop.eup %1665 }
 0x2c8   :  { %1540 = vmatmul.mubr.msk.f32.vlgmr.msra.gmra.mxu1 %vm123_vm0, %v1666_v48 }
 0x2c9   :  { %1554 = vmatpush3.msra.mxu1 %v1928_v6  ;;  %1561 = vmatprep.mubr.msk.f32.mxu1 %vm1823_vm1, %v1822_v0 }
 0x2ca   :  { %1555 = vmatprep.subr.mxu1 %v1822_v0 }
 0x2cb   :  { %1556 = vmatpush3.msra.mxu1 %v1930_v7 }
 0x2cc   :  { %1557 = vmatprep.subr.mxu1 %v1822_v0 }
 0x2cd   :  { %1558 = vmatpush3.msra.mxu1 %v1933_v8 }
 0x2ce   :  { %1559 = vmatprep.subr.mxu1 %v1822_v0 }
 0x2cf   :  { %1560 = vmatpush3.msra.mxu1 %v1939_v10 }
 0x2d0   :  { %1575 = vmatprep.subr.mxu1 %v1822_v0 }
 0x388   :  { %v566_v50 = vpop.f32.mrf.mxu1 }
 0x389   :  { %v570_v51 = vadd.f32 %v566_v50, %v496_v49 }
 0x38a   :  { %v1541_v52 = vpop.f32.mrf.mxu1 }
 0x38b   :  { %1667 = vtanh.f32 %v570_v51  ;;  %v1658_v51 = vld [vmem:[%s2155_s7 + $0x20] sm:$0xff]  }
 0x398   :  { %v1668_v53 = vpop.eup %1667 }
 0x399   :  { %1551 = vmatmul.mubr.msk.f32.vlgmr.msra.gmra.mxu0 %vm123_vm0, %v1668_v53 }
 0x39a   :  { %1565 = vmatpush3.msra.mxu0 %v1928_v6  ;;  %1572 = vmatprep.mubr.msk.f32.mxu0 %vm1823_vm1, %v1822_v0 }
 0x39b   :  { %1566 = vmatprep.subr.mxu0 %v1822_v0 }
 0x39c   :  { %1567 = vmatpush3.msra.mxu0 %v1930_v7 }
 0x39d   :  { %1568 = vmatprep.subr.mxu0 %v1822_v0 }
 0x39e   :  { %1569 = vmatpush3.msra.mxu0 %v1933_v8 }
 0x39f   :  { %1570 = vmatprep.subr.mxu0 %v1822_v0 }
 0x3a0   :  { %1571 = vmatpush3.msra.mxu0 %v1939_v10 }
 0x3a1   :  { %1586 = vmatprep.subr.bf16.mxu0 %v1822_v0 }
 0x459   :  { %v643_v55 = vpop.f32.mrf.mxu0 }
 0x45a   :  { %v647_v56 = vadd.f32 %v643_v55, %v573_v54 }
 0x45b   :  { %v1552_v57 = vpop.f32.mrf.mxu0 }
 0x45c   :  { %1669 = vtanh.f32 %v647_v56 }
 0x469   :  { %v1670_v58 = vpop.eup %1669 }
 0x46a   :  { %1562 = vmatmul.mubr.msk.f32.vlgmr.msra.gmra.mxu1 %vm123_vm0, %v1670_v58 }
 0x46b   :  { %1576 = vmatpush3.msra.mxu1 %v1928_v6  ;;  %1583 = vmatprep.mubr.msk.f32.mxu1 %vm1823_vm1, %v1822_v0  ;;  %v1648_v6 = vld [vmem:[%s2153_s5 + $0x8] sm:$0xff]  }
 0x46c   :  { %1577 = vmatprep.subr.mxu1 %v1822_v0 }
 0x46d   :  { %1578 = vmatpush3.msra.mxu1 %v1930_v7  ;;  %v1649_v7 = vld [vmem:[#allocation10 + $0x8] sm:$0xff]  }
 0x46e   :  { %1579 = vmatprep.subr.mxu1 %v1822_v0 }
 0x46f   :  { %1580 = vmatpush3.msra.mxu1 %v1933_v8  ;;  %v1650_v8 = vld [vmem:[%s2153_s5] sm:$0xff]  }
 0x470   :  { %1581 = vmatprep.subr.mxu1 %v1822_v0 }
 0x471   :  { %1582 = vmatpush3.msra.mxu1 %v1939_v10  ;;  %v1652_v10 = vld [vmem:[#allocation9] sm:$0xff]  }
 0x472   :  { %1594 = vmatprep.subr.bf16.mxu1 %v1822_v0 }
 0x52a   :  { %v720_v60 = vpop.f32.mrf.mxu1 }
 0x52b   :  { %v724_v61 = vadd.f32 %v720_v60, %v650_v59 }
 0x52c   :  { %v1563_v62 = vpop.f32.mrf.mxu1 }
 0x52d   :  { %1671 = vtanh.f32 %v724_v61 }
 0x53a   :  { %v1672_v63 = vpop.eup %1671 }
 0x53b   :  { %1573 = vmatmul.mubr.msk.f32.vlgmr.msra.gmra.mxu0 %vm123_vm0, %v1672_v63  ;;  %v1401_v63 = vld [vmem:[#allocation12] ss:$0 sm:$0xff] }
 0x53c   :  { %1590 = vmatprep.mubr.msk.bf16.mxu0 %vm1823_vm1, %v1822_v0  ;;  %1587 = vmatpush3.bf16.msra.mxu0 %v1649_v7 }
 0x53d   :  { %1588 = vmatprep.subr.bf16.mxu0 %v1822_v0 }
 0x540   :  { %1589 = vmatpush3.bf16.msra.mxu0 %v1651_v9 }
 0x541   :  { %1602 = vmatprep.subr.bf16.mxu0 %v1822_v0 }
 0x5fb   :  { %v797_v2 = vpop.f32.mrf.mxu0 }
 0x5fc   :  { %v801_v3 = vadd.f32 %v797_v2, %v727_v1 }
 0x5fd   :  { %v1574_v4 = vpop.f32.mrf.mxu0 }
 0x5fe   :  { %1673 = vtanh.f32 %v801_v3 }
 0x60b   :  { %v1674_v5 = vpop.eup %1673 }
 0x60c   :  { %1584 = vmatmul.mubr.msk.f32.vlgmr.msra.gmra.mxu1 %vm123_vm0, %v1674_v5 }
 0x60d   :  { %1598 = vmatprep.mubr.msk.bf16.mxu1 %vm1823_vm1, %v1822_v0  ;;  %1595 = vmatpush3.bf16.msra.mxu1 %v1648_v6 }
 0x60e   :  { %1596 = vmatprep.subr.bf16.mxu1 %v1822_v0 }
 0x611   :  { %1597 = vmatpush3.bf16.msra.mxu1 %v1650_v8 }
 0x612   :  { %1610 = vmatprep.subr.bf16.mxu1 %v1822_v0 }
 0x614   :  { %1599 = vmatmul.mubr.msk.bf16.vlgmr.msra.gmra.mxu1 %vm123_vm0, %v1652_v10 }
 0x615   :  { %1614 = vmatprep.mubr.msk.bf16.mxu1 %vm1823_vm1, %v1822_v0  ;;  %1611 = vmatpush3.bf16.msra.mxu1 %v1654_v22 }
 0x616   :  { %1612 = vmatprep.subr.bf16.mxu1 %v1822_v0 }
 0x619   :  { %1613 = vmatpush3.bf16.msra.mxu1 %v1656_v24 }
 0x61a   :  { %1626 = vmatprep.subr.bf16.mxu1 %v1822_v0 }
 0x6cc   :  { %v874_v12 = vpop.f32.mrf.mxu1 }
 0x6cd   :  { %v878_v13 = vadd.f32 %v874_v12, %v804_v11 }
 0x6ce   :  { %v1585_v14 = vpop.f32.mrf.mxu1 }
 0x6cf   :  { %1675 = vtanh.f32 %v878_v13 }
 0x6d4   :  { %v1000_v17 = vpop.f32.mrf.mxu1 }
 0x6d6   :  { %v1600_v18 = vpop.f32.mrf.mxu1 }
 0x6d8   :  { %v1003_v19 = vpop.f32.mrf.mxu1 }
 0x6da   :  { %v1601_v20 = vpop.f32.mrf.mxu1 }
 0x6dc   :  { %v1676_v15 = vpop.eup %1675 }
 0x6dd   :  { %v880_v16 = vpack.c.bf16 %v1676_v15, %v1676_v15  ;;  %v1659_v15 = vld [vmem:[%s2157_s9 + $0x8] sm:$0xff]  }
 0x6df   :  { %1591 = vmatmul.mubr.msk.bf16.vlgmr.msra.gmra.mxu0 %vm123_vm0, %v880_v16  ;;  %v1660_v16 = vld [vmem:[%s2157_s9] sm:$0xff]  }
 0x6e0   :  { %1606 = vmatprep.mubr.msk.bf16.mxu0 %vm1823_vm1, %v1822_v0  ;;  %1603 = vmatpush3.bf16.msra.mxu0 %v1653_v21 }
 0x6e1   :  { %1604 = vmatprep.subr.bf16.mxu0 %v1822_v0 }
 0x6e4   :  { %1605 = vmatpush3.bf16.msra.mxu0 %v1655_v23 }
 0x6e5   :  { %1618 = vmatprep.subr.bf16.mxu0 %v1822_v0 }
 0x79f   :  { %v934_v31 = vpop.f32.mrf.mxu0 }
 0x7a0   :  { %v1014_v32 = vrot.slane %v934_v31, %v1013_v30 }
 0x7a1   :  { %v1592_v34 = vpop.f32.mrf.mxu0 }
 0x7a2   :  { %v1015_v35 = vcombine.high %v1014_v32, %v1014_v32  ;;  %v1022_v36 = vrot.slane %v1014_v32, %v1013_v30 }
 0x7a3   :  { %v937_v37 = vpop.f32.mrf.mxu0 }
 0x7a4   :  { %v1033_v38 = vrot.slane %v1022_v36, %v1032_v33  ;;  %v1029_v39 = vrot.slane %v1015_v35, %v1013_v30 }
 0x7a5   :  { %v1593_v40 = vpop.f32.mrf.mxu0 }
 0x7a6   :  { %v2105_v41 = vadd.f32 %v1033_v38, %v1000_v17  ;;  %v1037_v42 = vrot.slane %v1029_v39, %v1032_v33 }
 0x7a8   :  { %1044 = vst.msk [vmem:[#allocation3 + $0x8] sm:$0xff] %vm123_vm0, %v2105_v41  ;;  %v2109_v43 = vadd.f32 %v1037_v42, %v1003_v19 }
 0x7aa   :  { %1045 = vst.msk [vmem:[#allocation3 + $0x18] sm:$0xff] %vm123_vm0, %v2109_v43  ;;  %v1173_v52 = vpack.c.bf16 %v2109_v43, %v2105_v41 }
 0x7af   :  { %v1048_v44 = vld [vmem:[#allocation3 + $0x7] sm:$0xff] }
 0x7b0   :  { %v1046_v47 = vld [vmem:[#allocation3 + $0x6] sm:$0xff] }
 0x7b1   :  { %v1049_v46 = vld [vmem:[#allocation3 + $0x17] sm:$0xff] }
 0x7b2   :  { %v1047_v48 = vld [vmem:[#allocation3 + $0x16] sm:$0xff]  ;;  %v1055_v49 = vpack.c.bf16 %v1049_v46, %v1048_v44 }
 0x7b3   :  { %v1050_v50 = vpack.c.bf16 %v1047_v48, %v1046_v47 }
 0x7b4   :  { %1607 = vmatmul.mubr.msk.bf16.vlgmr.msra.gmra.mxu0 %vm123_vm0, %v1055_v49 }
 0x7b5   :  { %1615 = vmatmul.mubr.msk.bf16.vlgmr.msra.gmra.mxu1 %vm123_vm0, %v1050_v50  ;;  %1619 = vmatpush3.bf16.msra.mxu0 %v1657_v45 }
 0x7b6   :  { %1622 = vmatprep.mubr.msk.bf16.mxu0 %vm1823_vm1, %v1822_v0  ;;  %1620 = vmatprep.subr.bf16.mxu0 %v1822_v0 }
 0x7b7   :  { %1630 = vmatprep.mubr.msk.bf16.mxu1 %vm1823_vm1, %v1822_v0  ;;  %1627 = vmatpush3.bf16.msra.mxu1 %v1659_v15 }
 0x7b8   :  { %1628 = vmatprep.subr.bf16.mxu1 %v1822_v0 }
 0x7b9   :  { %1621 = vmatpush3.bf16.msra.mxu0 %v1658_v51 }
 0x7bb   :  { %1629 = vmatpush3.bf16.msra.mxu1 %v1660_v16 }
 0x7bc   :  { %1623 = vmatmul.mubr.msk.bf16.vlgmr.msra.gmra.mxu0 %vm123_vm0, %v1173_v52 }
 0x874   :  { %v1110_v53 = vpop.f32.mrf.mxu0 }
 0x875   :  { %v1166_v54 = vpop.f32.mrf.mxu1 }
 0x876   :  { %v1608_v55 = vpop.f32.mrf.mxu0  ;;  %v1167_v61 = vadd.f32 %v1166_v54, %v1110_v53 }
 0x877   :  { %v1616_v56 = vpop.f32.mrf.mxu1 }
 0x878   :  { %v1113_v57 = vpop.f32.mrf.mxu0 }
 0x879   :  { %v1169_v58 = vpop.f32.mrf.mxu1 }
 0x87a   :  { %v1609_v59 = vpop.f32.mrf.mxu0  ;;  %v1170_v3 = vadd.f32 %v1169_v58, %v1113_v57 }
 0x87b   :  { %v1617_v60 = vpop.f32.mrf.mxu1 }
 0x87c   :  { %v1228_v62 = vpop.f32.mrf.mxu0 }
 0x87d   :  { %v1235_v1 = vadd.f32 %v1228_v62, %v1167_v61 }
 0x87e   :  { %v1624_v2 = vpop.f32.mrf.mxu0 }
 0x87f   :  { %v1244_v4 = vadd.f32 %v1401_v63, %v1235_v1 }
 0x880   :  { %v1231_v5 = vpop.f32.mrf.mxu0 }
 0x881   :  { %v1402_v6 = vmul.f32 -1.442695, %v1244_v4  ;;  %v1236_v7 = vadd.f32 %v1231_v5, %v1170_v3 }
 0x882   :  { %v1625_v8 = vpop.f32.mrf.mxu0 }
 0x883   :  { %1677 = vpow2.f32 %v1402_v6  ;;  %v1245_v9 = vadd.f32 %v1401_v63, %v1236_v7 }
 0x885   :  { %v1403_v10 = vmul.f32 -1.442695, %v1245_v9 }
 0x887   :  { %1679 = vpow2.f32 %v1403_v10 }
 0x890   :  { %v1678_v11 = vpop.eup %1677 }
 0x891   :  { %v1252_v12 = vadd.f32 1.0, %v1678_v11 }
 0x893   :  { %1681 = vrcp.f32 %v1252_v12 }
 0x894   :  { %v1680_v13 = vpop.eup %1679 }
 0x895   :  { %v1253_v14 = vadd.f32 1.0, %v1680_v13 }
 0x897   :  { %1683 = vrcp.f32 %v1253_v14 }
 0x8a0   :  { %v1682_v17 = vpop.eup %1681 }
 0x8a1   :  { %1260 = vrot.lane.b32.xlu0 %v1682_v17, %s1825_s22 }
 0x8a4   :  { %v1684_v18 = vpop.eup %1683 }
 0x8a5   :  { %1262 = vrot.lane.b32.xlu0 %v1684_v18, %s1825_s22 }
 0x913   :  { %v1261_v19 = vpop.permute.xlu0 %1260 }
 0x914   :  { %v1266_v20 = vmul.f32 %v1261_v19, %v1244_v4 }
 0x916   :  { %v1268_v22 = vadd.f32 %v1266_v20, %v2105_v41 }
 0x917   :  { %v1263_v21 = vpop.permute.xlu0 %1262 }
 0x918   :  { %v1267_v23 = vmul.f32 %v1263_v21, %v1245_v9  ;;  %v1270_v25 = vmul.f32 0.70710677, %v1268_v22 }
 0x91a   :  { %v1269_v24 = vadd.f32 %v1267_v23, %v2109_v43 }
 0x91c   :  { %v1271_v0 = vmul.f32 0.70710677, %v1269_v24 }
 0x91e   :  { %v1272_v26 = vpack.c.bf16 %v1271_v0, %v1270_v25 }
 0x920   :  { %1631 = vmatmul.mubr.msk.bf16.vlgmr.msra.gmra.mxu1 %vm123_vm0, %v1272_v26 }
 0x9e0   :  { %v1333_v28 = vpop.f32.mrf.mxu1 }
 0x9e1   :  { %v1334_v29 = vadd.f32 %v1404_v27, %v1333_v28 }
 0x9e2   :  { %v1632_v30 = vpop.f32.mrf.mxu1 }
 0x9e3   :  { %1340 = vst [vmem:[#allocation13] sm:$0xff] %v1334_v29 }
 0x9e4   :  { %v1336_v31 = vpop.f32.mrf.mxu1 }
 0x9e5   :  { %v1337_v32 = vadd.f32 %v1404_v27, %v1336_v31 }
 0x9e6   :  { %v1633_v33 = vpop.f32.mrf.mxu1 }
 0x9e7   :  { %1341 = vst [vmem:[#allocation13 + $0x8] sm:$0xff] %v1337_v32 }
 0x9e8   :  { %1796 = shalt.err (!%p1793_p1)
}
 0x9e9   :  { %1353 = dma.vmem_to_hbm [thread:$0]  %s1348_s24, 256, %s2159_s11, [#allocation6], %s1818_s13, %s1818_s13, %s1819_s14  }
 0x9ea   :  { %1811 = dma.done.wait [#allocation6], 256  }
 0x9eb   :  { %1812 = vsyncadd [#allocation6], 4294967040 }
 0x9ec   :  { %1357 = vsyncpa [#allocation5], 1 }
 0x9ed   :  { %1358 = vsyncpa [#allocation8], 1 }
 0x9ee   :  { %1359 = vsyncpa [#allocation11], 1 }
 0x9ef   :  { %1360 = vsyncpa [#allocation6], 1 }

</bundles_post_ra>
